<compile_context>
chip_gen: v5e
topology: v5e:2x2
jax: 0.10.0
libtpu: 0.0.40
codegen_flags: <defaults>
</compile_context>

<pallas_src>
import functools

import jax
import jax.numpy as jnp
from jax import lax
from jax.experimental import pallas as pl
from jax.experimental.pallas import tpu as pltpu

_LANE = 128
_SUB = 8


# ---------------------------------------------------------------------------
# Quadrature weights (deterministic, in-script).
# TODO(synk): torch_harmonics.get_quadrature_weights uses its own quadrature
# library; we use deterministic equiangular sin(theta)*dtheta*dphi weights
# (the IoU score is invariant to the overall normalization of the weights).
# ---------------------------------------------------------------------------
def equiangular_quad_weights(nlat: int, nlon: int) -> jnp.ndarray:
    theta = (jnp.arange(nlat, dtype=jnp.float32) + 0.5) * (jnp.pi / nlat)
    w = jnp.sin(theta) * (jnp.pi / nlat) * (2.0 * jnp.pi / nlon)
    return jnp.tile(w[:, None], (1, nlon))  # (nlat, nlon), constant over lon


# ---------------------------------------------------------------------------
# Pallas kernel: accumulate quadrature-weighted TP/FP/FN per class.
# ---------------------------------------------------------------------------
def _iou_stats_kernel(pred_ref, truth_ref, wlat_ref, out_ref, *,
                      num_classes: int, ignore_index: int, nlat: int,
                      tile_rows: int, group_rows: int, tiles_per_split: int,
                      vreg_acc: bool, unroll: int):
    # pred_ref : (1, C, TH, W)        logits, native dtype (bf16 or f32)
    # truth_ref: (1, TH, W)   int     ground-truth labels
    # wlat_ref : (TH, 1)      f32     per-latitude quadrature weights
    # out_ref  : (1, 1, 3*C, GR, W)   f32 partial stats, resident across n
    C = num_classes
    GR = group_rows
    W = pred_ref.shape[3]
    n = pl.program_id(2)
    tile_idx = pl.program_id(1) * tiles_per_split + n   # UNclamped global tile
    row_base = tile_idx * tile_rows
    n_groups = tile_rows // GR

    @pl.when(n == 0)
    def _init():
        out_ref[...] = jnp.zeros_like(out_ref)

    sub_iota = lax.broadcasted_iota(jnp.int32, (GR, 1), 0)

    def compute_group(gi):
        r0 = pl.multiple_of(gi * GR, GR)
        rows = pl.ds(r0, GR)

        # argmax over classes.  softmax is monotone, so argmax(softmax(x)) ==
        # argmax(x); strict ">" keeps torch.argmax first-occurrence ties.
        # Compares run in pred's native dtype (bf16 stays packed).
        best_val = pred_ref[0, 0, rows, :]                     # (GR, W)
        best_idx = jnp.zeros((GR, W), dtype=jnp.int32)
        for c in range(1, C):
            v = pred_ref[0, c, rows, :]
            take = v > best_val
            best_val = jnp.where(take, v, best_val)
            best_idx = jnp.where(take, jnp.int32(c), best_idx)

        tgt = truth_ref[0, rows, :].astype(jnp.int32)          # (GR, W)

        # Per-latitude quad weight broadcast over longitude; zero for rows
        # past the real latitude extent (ragged tail / fully-OOB duplicate
        # tiles from the split axis).  All stats are masked selects of this
        # weight, so padded-row garbage (even NaN) never contributes.
        rid = row_base + r0 + sub_iota                         # (GR, 1)
        quad = jnp.where(rid < nlat, wlat_ref[rows, :], 0.0)   # (GR, 1) f32

        ignore = tgt == jnp.int32(ignore_index)
        out_cls = jnp.where(ignore, jnp.int32(-1), best_idx)
        tgt = jnp.where(ignore, jnp.int32(-1), tgt)
        matched = tgt == out_cls
        m_quad = jnp.where(matched, quad, 0.0)                 # (GR, W)
        nm_quad = jnp.where(matched, 0.0, quad)                # (GR, W)
        return tgt, out_cls, m_quad, nm_quad

    if vreg_acc:
        # Hot path: 3*C per-class partial slabs carried in vregs across the
        # group loop; VMEM read-modify-writes happen once per grid step, so
        # the single v5e store slot is no longer the binding unit.
        def body(gi, accs):
            tp, fp, fn = accs
            tgt, out_cls, m_quad, nm_quad = compute_group(gi)
            new_tp, new_fp, new_fn = [], [], []
            for c in range(C):
                tm = tgt == jnp.int32(c)
                om = out_cls == jnp.int32(c)
                new_tp.append(tp[c] + jnp.where(tm, m_quad, 0.0))
                new_fp.append(fp[c] + jnp.where(om, nm_quad, 0.0))
                new_fn.append(fn[c] + jnp.where(tm, nm_quad, 0.0))
            return tuple(new_tp), tuple(new_fp), tuple(new_fn)

        zero = jnp.zeros((GR, W), jnp.float32)
        init = (tuple(zero for _ in range(C)),
                tuple(zero for _ in range(C)),
                tuple(zero for _ in range(C)))
        tp, fp, fn = lax.fori_loop(0, n_groups, body, init, unroll=unroll)
        for c in range(C):
            out_ref[0, 0, c] += tp[c]
            out_ref[0, 0, C + c] += fp[c]
            out_ref[0, 0, 2 * C + c] += fn[c]
    else:
        # Fallback for large C * W (carrying 3*C (GR, W) slabs would spill):
        # accumulate straight into the resident output block per group.
        # TODO(synk): for C >~ 32 an MXU one-hot weighted histogram would
        # offload the O(C) accumulation to an otherwise-idle unit.
        @pl.loop(0, n_groups)
        def _group(gi):
            tgt, out_cls, m_quad, nm_quad = compute_group(gi)
            for c in range(C):
                tm = tgt == jnp.int32(c)
                om = out_cls == jnp.int32(c)
                out_ref[0, 0, c] += jnp.where(tm, m_quad, 0.0)             # TP
                out_ref[0, 0, C + c] += jnp.where(om, nm_quad, 0.0)        # FP
                out_ref[0, 0, 2 * C + c] += jnp.where(tm, nm_quad, 0.0)    # FN


# ---------------------------------------------------------------------------
# Wrapper: tiling + final score glue.
# ---------------------------------------------------------------------------
def iou_s2(pred, truth, quad_weights, *, ignore_index: int = -100,
           mode: str = "micro", weight=None, max_tile_rows=None,
           n_splits=None, acc_in_vregs=None):
    """IoU on S2. pred: [B, C, H, W] float logits, truth: [B, H, W] int labels."""
    B, C, H, W = pred.shape

    # Per-latitude weights: get_quadrature_weights(..., tile=True) repeats the
    # same latitude weight across longitude, so streaming the dense (H, W)
    # plane would be wasted HBM traffic.
    qw = jnp.asarray(quad_weights, dtype=jnp.float32)
    wlat = (qw[:, 0] if qw.ndim == 2 else qw).reshape(H, 1)

    itemsize = jnp.dtype(pred.dtype).itemsize
    GR = 16 if itemsize == 2 else _SUB       # full packed bf16 vregs

    # ---- tile size / VMEM budget derived from the actual chip -------------
    try:
        info = pltpu.get_tpu_info()
        vmem_cap = int(getattr(info, "vmem_capacity_bytes", 0)) or (64 << 20)
    except Exception:
        vmem_cap = 64 << 20                  # conservative (v7x-sized)
    pred_budget = min(20 << 20, vmem_cap // 4)       # pred+truth double-buffer
    w_pad = -(-W // _LANE) * _LANE                   # physical lane-padded width
    bytes_per_row = (C * w_pad * itemsize
                     + w_pad * jnp.dtype(truth.dtype).itemsize)
    th = pred_budget // (2 * bytes_per_row)
    if max_tile_rows is not None:
        th = min(th, max_tile_rows)
    th = max(GR, (th // GR) * GR)
    h_pad = -(-H // GR) * GR
    th = min(th, h_pad)

    n_tiles = -(-H // th)
    if n_splits is None:
        n_splits = 2 if B == 1 else 1        # keep both v7x TensorCores busy
    n_splits = max(1, min(n_splits, n_tiles))
    tps = -(-n_tiles // n_splits)            # tiles per split (ceil)

    slab_vregs = (GR // _SUB) * (-(-W // _LANE))
    if acc_in_vregs is None:
        acc_in_vregs = 3 * C * slab_vregs <= 24
    n_groups = th // GR
    unroll = 2 if (n_groups % 2 == 0 and n_groups >= 2) else 1

    kernel = functools.partial(
        _iou_stats_kernel, num_classes=C, ignore_index=ignore_index, nlat=H,
        tile_rows=th, group_rows=GR, tiles_per_split=tps,
        vreg_acc=bool(acc_in_vregs), unroll=unroll)

    def tile_of(s, n):
        # Clamp so duplicate tiles (when n_splits doesn't divide n_tiles) read
        # valid data; their contribution is zeroed in-kernel via the row mask.
        return jnp.minimum(s * tps + n, n_tiles - 1)

    vmem_limit = int(max(32 << 20, min(vmem_cap - (8 << 20), 112 << 20)))

    stats = pl.pallas_call(
        kernel,
        grid=(B, n_splits, tps),
        in_specs=[
            pl.BlockSpec((1, C, th, W), lambda b, s, n: (b, 0, tile_of(s, n), 0)),
            pl.BlockSpec((1, th, W), lambda b, s, n: (b, tile_of(s, n), 0)),
            pl.BlockSpec((th, 1), lambda b, s, n: (tile_of(s, n), 0)),
        ],
        out_specs=pl.BlockSpec((1, 1, 3 * C, GR, W),
                               lambda b, s, n: (b, s, 0, 0, 0)),
        out_shape=jax.ShapeDtypeStruct((B, n_splits, 3 * C, GR, W),
                                       jnp.float32),
        compiler_params=pltpu.CompilerParams(
            dimension_semantics=("parallel", "parallel", "arbitrary"),
            vmem_limit_bytes=vmem_limit),
    )(pred, truth, wlat)

    # ---- tiny glue: reduce partials and form the IoU score.
    stats = stats.reshape(B, n_splits, 3, C, GR, W).sum(axis=(1, 4, 5))
    tp, fp, fn = stats[:, 0], stats[:, 1], stats[:, 2]        # (B, C) each

    if mode == "micro":
        if weight is not None:
            w = weight.reshape(1, C)
            tp_s = jnp.sum(tp * w)
            fp_s = jnp.sum(fp * w)
            fn_s = jnp.sum(fn * w)
        else:
            tp_s, fp_s, fn_s = tp.mean(), fp.mean(), fn.mean()
        return tp_s / (tp_s + fp_s + fn_s)
    else:  # macro
        tp_m, fp_m, fn_m = tp.mean(0), fp.mean(0), fn.mean(0)
        score = tp_m / (tp_m + fp_m + fn_m)
        score = jnp.where(jnp.isnan(score), 0.0, score)
        if weight is not None:
            return jnp.sum(score * weight.reshape(C))
        return score.mean()


# ---------------------------------------------------------------------------
# Pure-JAX reference (mirrors the PyTorch semantics) for verification.
# ---------------------------------------------------------------------------
def _reference_iou(pred, truth, quad, *, ignore_index=-100, mode="micro"):
    B, C, H, W = pred.shape
    pred_class = jnp.argmax(pred.astype(jnp.float32), axis=1)
    ignore = truth == ignore_index
    out = jnp.where(ignore, -1, pred_class)
    tgt = jnp.where(ignore, -1, truth)
    matched = out == tgt
    q = quad[None].astype(jnp.float32)
    tps, fps, fns = [], [], []
    for c in range(C):
        tm = tgt == c
        om = out == c
        tps.append(jnp.sum(jnp.where(matched & tm, q, 0.0), axis=(1, 2)))
        fps.append(jnp.sum(jnp.where((~matched) & om, q, 0.0), axis=(1, 2)))
        fns.append(jnp.sum(jnp.where((~matched) & tm, q, 0.0), axis=(1, 2)))
    tp = jnp.stack(tps, 1)
    fp = jnp.stack(fps, 1)
    fn = jnp.stack(fns, 1)
    if mode == "micro":
        tp, fp, fn = tp.mean(), fp.mean(), fn.mean()
        return tp / (tp + fp + fn)
    tp, fp, fn = tp.mean(0), fp.mean(0), fn.mean(0)
    s = tp / (tp + fp + fn)
    return jnp.where(jnp.isnan(s), 0.0, s).mean()


if __name__ == "__main__":
    ignore_index = -100
    key = jax.random.PRNGKey(0)

    # --- case 1: small equiangular grid, micro mode, single spatial tile ----
    B, C, H, W = 2, 4, 16, 16
    k1, k2, key = jax.random.split(key, 3)
    pred = jax.random.normal(k1, (B, C, H, W), dtype=jnp.float32)
    truth = jax.random.randint(k2, (B, H, W), 0, C, dtype=jnp.int32)
    truth = truth.at[0, 0, :3].set(ignore_index)  # exercise ignore_index path
    quad = equiangular_quad_weights(H, W)
    score = jax.block_until_ready(
        iou_s2(pred, truth, quad, ignore_index=ignore_index, mode="micro"))
    ref = _reference_iou(pred, truth, quad, ignore_index=ignore_index,
                         mode="micro")
    assert jnp.allclose(score, ref, rtol=1e-5, atol=1e-6), (score, ref)

    # --- case 2: multi-tile spatial accumulation, macro; both acc paths -----
    B, C, H, W = 2, 5, 32, 64
    k1, k2, key = jax.random.split(key, 3)
    pred = jax.random.normal(k1, (B, C, H, W), dtype=jnp.float32)
    truth = jax.random.randint(k2, (B, H, W), 0, C, dtype=jnp.int32)
    truth = truth.at[1, :2, :5].set(ignore_index)
    quad = equiangular_quad_weights(H, W)
    ref = _reference_iou(pred, truth, quad, ignore_index=ignore_index,
                         mode="macro")
    score_a = jax.block_until_ready(
        iou_s2(pred, truth, quad, ignore_index=ignore_index, mode="macro",
               max_tile_rows=8))                       # vreg-carry accumulators
    score_b = jax.block_until_ready(
        iou_s2(pred, truth, quad, ignore_index=ignore_index, mode="macro",
               max_tile_rows=8, acc_in_vregs=False))   # VMEM-accumulate fallback
    assert jnp.allclose(score_a, ref, rtol=1e-5, atol=1e-6), (score_a, ref)
    assert jnp.allclose(score_b, ref, rtol=1e-5, atol=1e-6), (score_b, ref)

    # --- case 3: B == 1 (spatial split across cores), bf16 logits (16-row
    #     groups), ragged latitude tail + clamped duplicate tile -------------
    B, C, H, W = 1, 3, 37, 48
    k1, k2, key = jax.random.split(key, 3)
    pred = jax.random.normal(k1, (B, C, H, W),
                             dtype=jnp.float32).astype(jnp.bfloat16)
    truth = jax.random.randint(k2, (B, H, W), 0, C, dtype=jnp.int32)
    truth = truth.at[0, 5, :7].set(ignore_index)
    quad = equiangular_quad_weights(H, W)
    score = jax.block_until_ready(
        iou_s2(pred, truth, quad, ignore_index=ignore_index, mode="micro",
               max_tile_rows=16))
    ref = _reference_iou(pred, truth, quad, ignore_index=ignore_index,
                         mode="micro")
    assert jnp.allclose(score, ref, rtol=1e-4, atol=1e-5), (score, ref)

    print("KERNEL_OK")
</pallas_src>

<mosaic_0001>
module attributes {stable_mosaic.version = 11 : i64} {
  func.func @_iou_stats_kernel(%arg0: i32, %arg1: i32, %arg2: i32, %arg3: memref<1x4x16x16xf32, #tpu.memory_space<vmem>>, %arg4: memref<1x16x16xi32, #tpu.memory_space<vmem>>, %arg5: memref<16x1xf32, #tpu.memory_space<vmem>>, %arg6: memref<1x1x12x8x16xf32, #tpu.memory_space<vmem>>) attributes {dimension_semantics = [#tpu.dimension_semantics<parallel>, #tpu.dimension_semantics<parallel>, #tpu.dimension_semantics<arbitrary>], iteration_bounds = array<i64: 2, 1, 1>, scalar_prefetch = 0 : i64, scratch_operands = 0 : i64, tpu.core_type = #tpu.core_type<tc>, window_params = [{transform_indices = @transform_0, window_bounds = array<i64: 1, 4, 16, 16>}, {transform_indices = @transform_1, window_bounds = array<i64: 1, 16, 16>}, {transform_indices = @transform_2, window_bounds = array<i64: 16, 1>}, {transform_indices = @transform_3, window_bounds = array<i64: 1, 1, 12, 8, 16>}]} {
    %c1_i32 = arith.constant 1 : i32
    %0 = arith.muli %arg1, %c1_i32 : i32
    %1 = arith.addi %0, %arg2 : i32
    %c16_i32 = arith.constant 16 : i32
    %2 = arith.muli %1, %c16_i32 : i32
    %c0_i32 = arith.constant 0 : i32
    %3 = arith.cmpi eq, %arg2, %c0_i32 : i32
    %4 = arith.extui %3 : i1 to i32
    %c0_i32_0 = arith.constant 0 : i32
    %5 = arith.cmpi ne, %4, %c0_i32_0 : i32
    scf.if %5 {
      %cst_201 = arith.constant 0.000000e+00 : f32
      %290 = vector.broadcast %cst_201 : f32 to vector<1x1x12x8x16xf32>
      %c0_202 = arith.constant 0 : index
      %c0_203 = arith.constant 0 : index
      %c0_204 = arith.constant 0 : index
      %c0_205 = arith.constant 0 : index
      %c0_206 = arith.constant 0 : index
      %291 = vector.load %arg6[%c0_202, %c0_203, %c0_204, %c0_205, %c0_206] : memref<1x1x12x8x16xf32, #tpu.memory_space<vmem>>, vector<1x1x12x8x16xf32>
      tpu.vector_store %arg6[%c0_202, %c0_203, %c0_204, %c0_205, %c0_206], %290 {strides = array<i32>} : memref<1x1x12x8x16xf32, #tpu.memory_space<vmem>>, vector<1x1x12x8x16xf32>,
    } else {
    }
    %6 = tpu.iota {dimensions = array<i32: 0>} : vector<8x1xi32>
    %cst = arith.constant 0.000000e+00 : f32
    %7 = vector.broadcast %cst : f32 to vector<8x16xf32>
    %c0_i32_1 = arith.constant 0 : i32
    %c8_i32 = arith.constant 8 : i32
    %8 = arith.muli %c0_i32_1, %c8_i32 : i32
    %9 = tpu.assume_multiple %8, 8 : i32
    %c0 = arith.constant 0 : index
    %c0_2 = arith.constant 0 : index
    %10 = arith.index_cast %9 : i32 to index
    %c0_3 = arith.constant 0 : index
    %11 = vector.load %arg3[%c0, %c0_2, %10, %c0_3] : memref<1x4x16x16xf32, #tpu.memory_space<vmem>>, vector<1x1x8x16xf32>
    %12 = vector.shape_cast %11 : vector<1x1x8x16xf32> to vector<8x16xf32>
    %c0_i32_4 = arith.constant 0 : i32
    %13 = vector.broadcast %c0_i32_4 : i32 to vector<8x16xi32>
    %c0_5 = arith.constant 0 : index
    %c1 = arith.constant 1 : index
    %14 = arith.index_cast %9 : i32 to index
    %c0_6 = arith.constant 0 : index
    %15 = vector.load %arg3[%c0_5, %c1, %14, %c0_6] : memref<1x4x16x16xf32, #tpu.memory_space<vmem>>, vector<1x1x8x16xf32>
    %16 = vector.shape_cast %15 : vector<1x1x8x16xf32> to vector<8x16xf32>
    %17 = arith.cmpf ogt, %16, %12 : vector<8x16xf32>
    %18 = arith.select %17, %16, %12 : vector<8x16xi1>, vector<8x16xf32>
    %c1_i32_7 = arith.constant 1 : i32
    %19 = vector.broadcast %c1_i32_7 : i32 to vector<8x16xi32>
    %20 = arith.select %17, %19, %13 : vector<8x16xi1>, vector<8x16xi32>
    %c0_8 = arith.constant 0 : index
    %c2 = arith.constant 2 : index
    %21 = arith.index_cast %9 : i32 to index
    %c0_9 = arith.constant 0 : index
    %22 = vector.load %arg3[%c0_8, %c2, %21, %c0_9] : memref<1x4x16x16xf32, #tpu.memory_space<vmem>>, vector<1x1x8x16xf32>
    %23 = vector.shape_cast %22 : vector<1x1x8x16xf32> to vector<8x16xf32>
    %24 = arith.cmpf ogt, %23, %18 : vector<8x16xf32>
    %25 = arith.select %24, %23, %18 : vector<8x16xi1>, vector<8x16xf32>
    %c2_i32 = arith.constant 2 : i32
    %26 = vector.broadcast %c2_i32 : i32 to vector<8x16xi32>
    %27 = arith.select %24, %26, %20 : vector<8x16xi1>, vector<8x16xi32>
    %c0_10 = arith.constant 0 : index
    %c3 = arith.constant 3 : index
    %28 = arith.index_cast %9 : i32 to index
    %c0_11 = arith.constant 0 : index
    %29 = vector.load %arg3[%c0_10, %c3, %28, %c0_11] : memref<1x4x16x16xf32, #tpu.memory_space<vmem>>, vector<1x1x8x16xf32>
    %30 = vector.shape_cast %29 : vector<1x1x8x16xf32> to vector<8x16xf32>
    %31 = arith.cmpf ogt, %30, %25 : vector<8x16xf32>
    %c3_i32 = arith.constant 3 : i32
    %32 = vector.broadcast %c3_i32 : i32 to vector<8x16xi32>
    %33 = arith.select %31, %32, %27 : vector<8x16xi1>, vector<8x16xi32>
    %c0_12 = arith.constant 0 : index
    %34 = arith.index_cast %9 : i32 to index
    %c0_13 = arith.constant 0 : index
    %35 = vector.load %arg4[%c0_12, %34, %c0_13] : memref<1x16x16xi32, #tpu.memory_space<vmem>>, vector<1x8x16xi32>
    %36 = vector.shape_cast %35 : vector<1x8x16xi32> to vector<8x16xi32>
    %37 = arith.addi %2, %9 : i32
    %38 = vector.broadcast %37 : i32 to vector<8x1xi32>
    %39 = arith.addi %38, %6 : vector<8x1xi32>
    %c16_i32_14 = arith.constant 16 : i32
    %40 = vector.broadcast %c16_i32_14 : i32 to vector<8x1xi32>
    %41 = arith.cmpi slt, %39, %40 : vector<8x1xi32>
    %42 = arith.index_cast %9 : i32 to index
    %c0_15 = arith.constant 0 : index
    %43 = vector.load %arg5[%42, %c0_15] : memref<16x1xf32, #tpu.memory_space<vmem>>, vector<8x1xf32>
    %cst_16 = arith.constant 0.000000e+00 : f32
    %44 = vector.broadcast %cst_16 : f32 to vector<8x1xf32>
    %45 = arith.select %41, %43, %44 : vector<8x1xi1>, vector<8x1xf32>
    %c-100_i32 = arith.constant -100 : i32
    %46 = vector.broadcast %c-100_i32 : i32 to vector<8x16xi32>
    %47 = arith.cmpi eq, %36, %46 : vector<8x16xi32>
    %c-1_i32 = arith.constant -1 : i32
    %48 = vector.broadcast %c-1_i32 : i32 to vector<8x16xi32>
    %49 = arith.select %47, %48, %33 : vector<8x16xi1>, vector<8x16xi32>
    %c-1_i32_17 = arith.constant -1 : i32
    %50 = vector.broadcast %c-1_i32_17 : i32 to vector<8x16xi32>
    %51 = arith.select %47, %50, %36 : vector<8x16xi1>, vector<8x16xi32>
    %52 = arith.cmpi eq, %51, %49 : vector<8x16xi32>
    %cst_18 = arith.constant 0.000000e+00 : f32
    %53 = vector.shape_cast %45 : vector<8x1xf32> to vector<8x1xf32>
    %54 = vector.broadcast %53 : vector<8x1xf32> to vector<8x16xf32>
    %55 = vector.broadcast %cst_18 : f32 to vector<8x16xf32>
    %56 = arith.select %52, %54, %55 : vector<8x16xi1>, vector<8x16xf32>
    %cst_19 = arith.constant 0.000000e+00 : f32
    %57 = vector.broadcast %cst_19 : f32 to vector<8x16xf32>
    %58 = vector.shape_cast %45 : vector<8x1xf32> to vector<8x1xf32>
    %59 = vector.broadcast %58 : vector<8x1xf32> to vector<8x16xf32>
    %60 = arith.select %52, %57, %59 : vector<8x16xi1>, vector<8x16xf32>
    %c0_i32_20 = arith.constant 0 : i32
    %61 = vector.broadcast %c0_i32_20 : i32 to vector<8x16xi32>
    %62 = arith.cmpi eq, %51, %61 : vector<8x16xi32>
    %c0_i32_21 = arith.constant 0 : i32
    %63 = vector.broadcast %c0_i32_21 : i32 to vector<8x16xi32>
    %64 = arith.cmpi eq, %49, %63 : vector<8x16xi32>
    %cst_22 = arith.constant 0.000000e+00 : f32
    %65 = vector.broadcast %cst_22 : f32 to vector<8x16xf32>
    %66 = arith.select %62, %56, %65 : vector<8x16xi1>, vector<8x16xf32>
    %67 = arith.addf %7, %66 : vector<8x16xf32>
    %cst_23 = arith.constant 0.000000e+00 : f32
    %68 = vector.broadcast %cst_23 : f32 to vector<8x16xf32>
    %69 = arith.select %64, %60, %68 : vector<8x16xi1>, vector<8x16xf32>
    %70 = arith.addf %7, %69 : vector<8x16xf32>
    %cst_24 = arith.constant 0.000000e+00 : f32
    %71 = vector.broadcast %cst_24 : f32 to vector<8x16xf32>
    %72 = arith.select %62, %60, %71 : vector<8x16xi1>, vector<8x16xf32>
    %73 = arith.addf %7, %72 : vector<8x16xf32>
    %c1_i32_25 = arith.constant 1 : i32
    %74 = vector.broadcast %c1_i32_25 : i32 to vector<8x16xi32>
    %75 = arith.cmpi eq, %51, %74 : vector<8x16xi32>
    %c1_i32_26 = arith.constant 1 : i32
    %76 = vector.broadcast %c1_i32_26 : i32 to vector<8x16xi32>
    %77 = arith.cmpi eq, %49, %76 : vector<8x16xi32>
    %cst_27 = arith.constant 0.000000e+00 : f32
    %78 = vector.broadcast %cst_27 : f32 to vector<8x16xf32>
    %79 = arith.select %75, %56, %78 : vector<8x16xi1>, vector<8x16xf32>
    %80 = arith.addf %7, %79 : vector<8x16xf32>
    %cst_28 = arith.constant 0.000000e+00 : f32
    %81 = vector.broadcast %cst_28 : f32 to vector<8x16xf32>
    %82 = arith.select %77, %60, %81 : vector<8x16xi1>, vector<8x16xf32>
    %83 = arith.addf %7, %82 : vector<8x16xf32>
    %cst_29 = arith.constant 0.000000e+00 : f32
    %84 = vector.broadcast %cst_29 : f32 to vector<8x16xf32>
    %85 = arith.select %75, %60, %84 : vector<8x16xi1>, vector<8x16xf32>
    %86 = arith.addf %7, %85 : vector<8x16xf32>
    %c2_i32_30 = arith.constant 2 : i32
    %87 = vector.broadcast %c2_i32_30 : i32 to vector<8x16xi32>
    %88 = arith.cmpi eq, %51, %87 : vector<8x16xi32>
    %c2_i32_31 = arith.constant 2 : i32
    %89 = vector.broadcast %c2_i32_31 : i32 to vector<8x16xi32>
    %90 = arith.cmpi eq, %49, %89 : vector<8x16xi32>
    %cst_32 = arith.constant 0.000000e+00 : f32
    %91 = vector.broadcast %cst_32 : f32 to vector<8x16xf32>
    %92 = arith.select %88, %56, %91 : vector<8x16xi1>, vector<8x16xf32>
    %93 = arith.addf %7, %92 : vector<8x16xf32>
    %cst_33 = arith.constant 0.000000e+00 : f32
    %94 = vector.broadcast %cst_33 : f32 to vector<8x16xf32>
    %95 = arith.select %90, %60, %94 : vector<8x16xi1>, vector<8x16xf32>
    %96 = arith.addf %7, %95 : vector<8x16xf32>
    %cst_34 = arith.constant 0.000000e+00 : f32
    %97 = vector.broadcast %cst_34 : f32 to vector<8x16xf32>
    %98 = arith.select %88, %60, %97 : vector<8x16xi1>, vector<8x16xf32>
    %99 = arith.addf %7, %98 : vector<8x16xf32>
    %c3_i32_35 = arith.constant 3 : i32
    %100 = vector.broadcast %c3_i32_35 : i32 to vector<8x16xi32>
    %101 = arith.cmpi eq, %51, %100 : vector<8x16xi32>
    %c3_i32_36 = arith.constant 3 : i32
    %102 = vector.broadcast %c3_i32_36 : i32 to vector<8x16xi32>
    %103 = arith.cmpi eq, %49, %102 : vector<8x16xi32>
    %cst_37 = arith.constant 0.000000e+00 : f32
    %104 = vector.broadcast %cst_37 : f32 to vector<8x16xf32>
    %105 = arith.select %101, %56, %104 : vector<8x16xi1>, vector<8x16xf32>
    %106 = arith.addf %7, %105 : vector<8x16xf32>
    %cst_38 = arith.constant 0.000000e+00 : f32
    %107 = vector.broadcast %cst_38 : f32 to vector<8x16xf32>
    %108 = arith.select %103, %60, %107 : vector<8x16xi1>, vector<8x16xf32>
    %109 = arith.addf %7, %108 : vector<8x16xf32>
    %cst_39 = arith.constant 0.000000e+00 : f32
    %110 = vector.broadcast %cst_39 : f32 to vector<8x16xf32>
    %111 = arith.select %101, %60, %110 : vector<8x16xi1>, vector<8x16xf32>
    %112 = arith.addf %7, %111 : vector<8x16xf32>
    %c1_i32_40 = arith.constant 1 : i32
    %c8_i32_41 = arith.constant 8 : i32
    %113 = arith.muli %c1_i32_40, %c8_i32_41 : i32
    %114 = tpu.assume_multiple %113, 8 : i32
    %c0_42 = arith.constant 0 : index
    %c0_43 = arith.constant 0 : index
    %115 = arith.index_cast %114 : i32 to index
    %c0_44 = arith.constant 0 : index
    %116 = vector.load %arg3[%c0_42, %c0_43, %115, %c0_44] : memref<1x4x16x16xf32, #tpu.memory_space<vmem>>, vector<1x1x8x16xf32>
    %117 = vector.shape_cast %116 : vector<1x1x8x16xf32> to vector<8x16xf32>
    %c0_i32_45 = arith.constant 0 : i32
    %118 = vector.broadcast %c0_i32_45 : i32 to vector<8x16xi32>
    %c0_46 = arith.constant 0 : index
    %c1_47 = arith.constant 1 : index
    %119 = arith.index_cast %114 : i32 to index
    %c0_48 = arith.constant 0 : index
    %120 = vector.load %arg3[%c0_46, %c1_47, %119, %c0_48] : memref<1x4x16x16xf32, #tpu.memory_space<vmem>>, vector<1x1x8x16xf32>
    %121 = vector.shape_cast %120 : vector<1x1x8x16xf32> to vector<8x16xf32>
    %122 = arith.cmpf ogt, %121, %117 : vector<8x16xf32>
    %123 = arith.select %122, %121, %117 : vector<8x16xi1>, vector<8x16xf32>
    %c1_i32_49 = arith.constant 1 : i32
    %124 = vector.broadcast %c1_i32_49 : i32 to vector<8x16xi32>
    %125 = arith.select %122, %124, %118 : vector<8x16xi1>, vector<8x16xi32>
    %c0_50 = arith.constant 0 : index
    %c2_51 = arith.constant 2 : index
    %126 = arith.index_cast %114 : i32 to index
    %c0_52 = arith.constant 0 : index
    %127 = vector.load %arg3[%c0_50, %c2_51, %126, %c0_52] : memref<1x4x16x16xf32, #tpu.memory_space<vmem>>, vector<1x1x8x16xf32>
    %128 = vector.shape_cast %127 : vector<1x1x8x16xf32> to vector<8x16xf32>
    %129 = arith.cmpf ogt, %128, %123 : vector<8x16xf32>
    %130 = arith.select %129, %128, %123 : vector<8x16xi1>, vector<8x16xf32>
    %c2_i32_53 = arith.constant 2 : i32
    %131 = vector.broadcast %c2_i32_53 : i32 to vector<8x16xi32>
    %132 = arith.select %129, %131, %125 : vector<8x16xi1>, vector<8x16xi32>
    %c0_54 = arith.constant 0 : index
    %c3_55 = arith.constant 3 : index
    %133 = arith.index_cast %114 : i32 to index
    %c0_56 = arith.constant 0 : index
    %134 = vector.load %arg3[%c0_54, %c3_55, %133, %c0_56] : memref<1x4x16x16xf32, #tpu.memory_space<vmem>>, vector<1x1x8x16xf32>
    %135 = vector.shape_cast %134 : vector<1x1x8x16xf32> to vector<8x16xf32>
    %136 = arith.cmpf ogt, %135, %130 : vector<8x16xf32>
    %c3_i32_57 = arith.constant 3 : i32
    %137 = vector.broadcast %c3_i32_57 : i32 to vector<8x16xi32>
    %138 = arith.select %136, %137, %132 : vector<8x16xi1>, vector<8x16xi32>
    %c0_58 = arith.constant 0 : index
    %139 = arith.index_cast %114 : i32 to index
    %c0_59 = arith.constant 0 : index
    %140 = vector.load %arg4[%c0_58, %139, %c0_59] : memref<1x16x16xi32, #tpu.memory_space<vmem>>, vector<1x8x16xi32>
    %141 = vector.shape_cast %140 : vector<1x8x16xi32> to vector<8x16xi32>
    %142 = arith.addi %2, %114 : i32
    %143 = vector.broadcast %142 : i32 to vector<8x1xi32>
    %144 = arith.addi %143, %6 : vector<8x1xi32>
    %c16_i32_60 = arith.constant 16 : i32
    %145 = vector.broadcast %c16_i32_60 : i32 to vector<8x1xi32>
    %146 = arith.cmpi slt, %144, %145 : vector<8x1xi32>
    %147 = arith.index_cast %114 : i32 to index
    %c0_61 = arith.constant 0 : index
    %148 = vector.load %arg5[%147, %c0_61] : memref<16x1xf32, #tpu.memory_space<vmem>>, vector<8x1xf32>
    %cst_62 = arith.constant 0.000000e+00 : f32
    %149 = vector.broadcast %cst_62 : f32 to vector<8x1xf32>
    %150 = arith.select %146, %148, %149 : vector<8x1xi1>, vector<8x1xf32>
    %c-100_i32_63 = arith.constant -100 : i32
    %151 = vector.broadcast %c-100_i32_63 : i32 to vector<8x16xi32>
    %152 = arith.cmpi eq, %141, %151 : vector<8x16xi32>
    %c-1_i32_64 = arith.constant -1 : i32
    %153 = vector.broadcast %c-1_i32_64 : i32 to vector<8x16xi32>
    %154 = arith.select %152, %153, %138 : vector<8x16xi1>, vector<8x16xi32>
    %c-1_i32_65 = arith.constant -1 : i32
    %155 = vector.broadcast %c-1_i32_65 : i32 to vector<8x16xi32>
    %156 = arith.select %152, %155, %141 : vector<8x16xi1>, vector<8x16xi32>
    %157 = arith.cmpi eq, %156, %154 : vector<8x16xi32>
    %cst_66 = arith.constant 0.000000e+00 : f32
    %158 = vector.shape_cast %150 : vector<8x1xf32> to vector<8x1xf32>
    %159 = vector.broadcast %158 : vector<8x1xf32> to vector<8x16xf32>
    %160 = vector.broadcast %cst_66 : f32 to vector<8x16xf32>
    %161 = arith.select %157, %159, %160 : vector<8x16xi1>, vector<8x16xf32>
    %cst_67 = arith.constant 0.000000e+00 : f32
    %162 = vector.broadcast %cst_67 : f32 to vector<8x16xf32>
    %163 = vector.shape_cast %150 : vector<8x1xf32> to vector<8x1xf32>
    %164 = vector.broadcast %163 : vector<8x1xf32> to vector<8x16xf32>
    %165 = arith.select %157, %162, %164 : vector<8x16xi1>, vector<8x16xf32>
    %c0_i32_68 = arith.constant 0 : i32
    %166 = vector.broadcast %c0_i32_68 : i32 to vector<8x16xi32>
    %167 = arith.cmpi eq, %156, %166 : vector<8x16xi32>
    %c0_i32_69 = arith.constant 0 : i32
    %168 = vector.broadcast %c0_i32_69 : i32 to vector<8x16xi32>
    %169 = arith.cmpi eq, %154, %168 : vector<8x16xi32>
    %cst_70 = arith.constant 0.000000e+00 : f32
    %170 = vector.broadcast %cst_70 : f32 to vector<8x16xf32>
    %171 = arith.select %167, %161, %170 : vector<8x16xi1>, vector<8x16xf32>
    %172 = arith.addf %67, %171 : vector<8x16xf32>
    %cst_71 = arith.constant 0.000000e+00 : f32
    %173 = vector.broadcast %cst_71 : f32 to vector<8x16xf32>
    %174 = arith.select %169, %165, %173 : vector<8x16xi1>, vector<8x16xf32>
    %175 = arith.addf %70, %174 : vector<8x16xf32>
    %cst_72 = arith.constant 0.000000e+00 : f32
    %176 = vector.broadcast %cst_72 : f32 to vector<8x16xf32>
    %177 = arith.select %167, %165, %176 : vector<8x16xi1>, vector<8x16xf32>
    %178 = arith.addf %73, %177 : vector<8x16xf32>
    %c1_i32_73 = arith.constant 1 : i32
    %179 = vector.broadcast %c1_i32_73 : i32 to vector<8x16xi32>
    %180 = arith.cmpi eq, %156, %179 : vector<8x16xi32>
    %c1_i32_74 = arith.constant 1 : i32
    %181 = vector.broadcast %c1_i32_74 : i32 to vector<8x16xi32>
    %182 = arith.cmpi eq, %154, %181 : vector<8x16xi32>
    %cst_75 = arith.constant 0.000000e+00 : f32
    %183 = vector.broadcast %cst_75 : f32 to vector<8x16xf32>
    %184 = arith.select %180, %161, %183 : vector<8x16xi1>, vector<8x16xf32>
    %185 = arith.addf %80, %184 : vector<8x16xf32>
    %cst_76 = arith.constant 0.000000e+00 : f32
    %186 = vector.broadcast %cst_76 : f32 to vector<8x16xf32>
    %187 = arith.select %182, %165, %186 : vector<8x16xi1>, vector<8x16xf32>
    %188 = arith.addf %83, %187 : vector<8x16xf32>
    %cst_77 = arith.constant 0.000000e+00 : f32
    %189 = vector.broadcast %cst_77 : f32 to vector<8x16xf32>
    %190 = arith.select %180, %165, %189 : vector<8x16xi1>, vector<8x16xf32>
    %191 = arith.addf %86, %190 : vector<8x16xf32>
    %c2_i32_78 = arith.constant 2 : i32
    %192 = vector.broadcast %c2_i32_78 : i32 to vector<8x16xi32>
    %193 = arith.cmpi eq, %156, %192 : vector<8x16xi32>
    %c2_i32_79 = arith.constant 2 : i32
    %194 = vector.broadcast %c2_i32_79 : i32 to vector<8x16xi32>
    %195 = arith.cmpi eq, %154, %194 : vector<8x16xi32>
    %cst_80 = arith.constant 0.000000e+00 : f32
    %196 = vector.broadcast %cst_80 : f32 to vector<8x16xf32>
    %197 = arith.select %193, %161, %196 : vector<8x16xi1>, vector<8x16xf32>
    %198 = arith.addf %93, %197 : vector<8x16xf32>
    %cst_81 = arith.constant 0.000000e+00 : f32
    %199 = vector.broadcast %cst_81 : f32 to vector<8x16xf32>
    %200 = arith.select %195, %165, %199 : vector<8x16xi1>, vector<8x16xf32>
    %201 = arith.addf %96, %200 : vector<8x16xf32>
    %cst_82 = arith.constant 0.000000e+00 : f32
    %202 = vector.broadcast %cst_82 : f32 to vector<8x16xf32>
    %203 = arith.select %193, %165, %202 : vector<8x16xi1>, vector<8x16xf32>
    %204 = arith.addf %99, %203 : vector<8x16xf32>
    %c3_i32_83 = arith.constant 3 : i32
    %205 = vector.broadcast %c3_i32_83 : i32 to vector<8x16xi32>
    %206 = arith.cmpi eq, %156, %205 : vector<8x16xi32>
    %c3_i32_84 = arith.constant 3 : i32
    %207 = vector.broadcast %c3_i32_84 : i32 to vector<8x16xi32>
    %208 = arith.cmpi eq, %154, %207 : vector<8x16xi32>
    %cst_85 = arith.constant 0.000000e+00 : f32
    %209 = vector.broadcast %cst_85 : f32 to vector<8x16xf32>
    %210 = arith.select %206, %161, %209 : vector<8x16xi1>, vector<8x16xf32>
    %211 = arith.addf %106, %210 : vector<8x16xf32>
    %cst_86 = arith.constant 0.000000e+00 : f32
    %212 = vector.broadcast %cst_86 : f32 to vector<8x16xf32>
    %213 = arith.select %208, %165, %212 : vector<8x16xi1>, vector<8x16xf32>
    %214 = arith.addf %109, %213 : vector<8x16xf32>
    %cst_87 = arith.constant 0.000000e+00 : f32
    %215 = vector.broadcast %cst_87 : f32 to vector<8x16xf32>
    %216 = arith.select %206, %165, %215 : vector<8x16xi1>, vector<8x16xf32>
    %217 = arith.addf %112, %216 : vector<8x16xf32>
    %c2_i32_88 = arith.constant 2 : i32
    %c0_89 = arith.constant 0 : index
    %c0_90 = arith.constant 0 : index
    %c0_91 = arith.constant 0 : index
    %c0_92 = arith.constant 0 : index
    %c0_93 = arith.constant 0 : index
    %218 = vector.load %arg6[%c0_89, %c0_90, %c0_91, %c0_92, %c0_93] : memref<1x1x12x8x16xf32, #tpu.memory_space<vmem>>, vector<1x1x1x8x16xf32>
    %219 = vector.shape_cast %218 : vector<1x1x1x8x16xf32> to vector<8x16xf32>
    %220 = arith.addf %219, %172 : vector<8x16xf32>
    %c0_94 = arith.constant 0 : index
    %c0_95 = arith.constant 0 : index
    %c0_96 = arith.constant 0 : index
    %c0_97 = arith.constant 0 : index
    %c0_98 = arith.constant 0 : index
    %221 = vector.load %arg6[%c0_94, %c0_95, %c0_96, %c0_97, %c0_98] : memref<1x1x12x8x16xf32, #tpu.memory_space<vmem>>, vector<1x1x1x8x16xf32>
    %222 = vector.shape_cast %221 : vector<1x1x1x8x16xf32> to vector<8x16xf32>
    %223 = vector.shape_cast %220 : vector<8x16xf32> to vector<1x1x1x8x16xf32>
    tpu.vector_store %arg6[%c0_94, %c0_95, %c0_96, %c0_97, %c0_98], %223 {strides = array<i32>} : memref<1x1x12x8x16xf32, #tpu.memory_space<vmem>>, vector<1x1x1x8x16xf32>,
    %c0_99 = arith.constant 0 : index
    %c0_100 = arith.constant 0 : index
    %c4 = arith.constant 4 : index
    %c0_101 = arith.constant 0 : index
    %c0_102 = arith.constant 0 : index
    %224 = vector.load %arg6[%c0_99, %c0_100, %c4, %c0_101, %c0_102] : memref<1x1x12x8x16xf32, #tpu.memory_space<vmem>>, vector<1x1x1x8x16xf32>
    %225 = vector.shape_cast %224 : vector<1x1x1x8x16xf32> to vector<8x16xf32>
    %226 = arith.addf %225, %175 : vector<8x16xf32>
    %c0_103 = arith.constant 0 : index
    %c0_104 = arith.constant 0 : index
    %c4_105 = arith.constant 4 : index
    %c0_106 = arith.constant 0 : index
    %c0_107 = arith.constant 0 : index
    %227 = vector.load %arg6[%c0_103, %c0_104, %c4_105, %c0_106, %c0_107] : memref<1x1x12x8x16xf32, #tpu.memory_space<vmem>>, vector<1x1x1x8x16xf32>
    %228 = vector.shape_cast %227 : vector<1x1x1x8x16xf32> to vector<8x16xf32>
    %229 = vector.shape_cast %226 : vector<8x16xf32> to vector<1x1x1x8x16xf32>
    tpu.vector_store %arg6[%c0_103, %c0_104, %c4_105, %c0_106, %c0_107], %229 {strides = array<i32>} : memref<1x1x12x8x16xf32, #tpu.memory_space<vmem>>, vector<1x1x1x8x16xf32>,
    %c0_108 = arith.constant 0 : index
    %c0_109 = arith.constant 0 : index
    %c8 = arith.constant 8 : index
    %c0_110 = arith.constant 0 : index
    %c0_111 = arith.constant 0 : index
    %230 = vector.load %arg6[%c0_108, %c0_109, %c8, %c0_110, %c0_111] : memref<1x1x12x8x16xf32, #tpu.memory_space<vmem>>, vector<1x1x1x8x16xf32>
    %231 = vector.shape_cast %230 : vector<1x1x1x8x16xf32> to vector<8x16xf32>
    %232 = arith.addf %231, %178 : vector<8x16xf32>
    %c0_112 = arith.constant 0 : index
    %c0_113 = arith.constant 0 : index
    %c8_114 = arith.constant 8 : index
    %c0_115 = arith.constant 0 : index
    %c0_116 = arith.constant 0 : index
    %233 = vector.load %arg6[%c0_112, %c0_113, %c8_114, %c0_115, %c0_116] : memref<1x1x12x8x16xf32, #tpu.memory_space<vmem>>, vector<1x1x1x8x16xf32>
    %234 = vector.shape_cast %233 : vector<1x1x1x8x16xf32> to vector<8x16xf32>
    %235 = vector.shape_cast %232 : vector<8x16xf32> to vector<1x1x1x8x16xf32>
    tpu.vector_store %arg6[%c0_112, %c0_113, %c8_114, %c0_115, %c0_116], %235 {strides = array<i32>} : memref<1x1x12x8x16xf32, #tpu.memory_space<vmem>>, vector<1x1x1x8x16xf32>,
    %c0_117 = arith.constant 0 : index
    %c0_118 = arith.constant 0 : index
    %c1_119 = arith.constant 1 : index
    %c0_120 = arith.constant 0 : index
    %c0_121 = arith.constant 0 : index
    %236 = vector.load %arg6[%c0_117, %c0_118, %c1_119, %c0_120, %c0_121] : memref<1x1x12x8x16xf32, #tpu.memory_space<vmem>>, vector<1x1x1x8x16xf32>
    %237 = vector.shape_cast %236 : vector<1x1x1x8x16xf32> to vector<8x16xf32>
    %238 = arith.addf %237, %185 : vector<8x16xf32>
    %c0_122 = arith.constant 0 : index
    %c0_123 = arith.constant 0 : index
    %c1_124 = arith.constant 1 : index
    %c0_125 = arith.constant 0 : index
    %c0_126 = arith.constant 0 : index
    %239 = vector.load %arg6[%c0_122, %c0_123, %c1_124, %c0_125, %c0_126] : memref<1x1x12x8x16xf32, #tpu.memory_space<vmem>>, vector<1x1x1x8x16xf32>
    %240 = vector.shape_cast %239 : vector<1x1x1x8x16xf32> to vector<8x16xf32>
    %241 = vector.shape_cast %238 : vector<8x16xf32> to vector<1x1x1x8x16xf32>
    tpu.vector_store %arg6[%c0_122, %c0_123, %c1_124, %c0_125, %c0_126], %241 {strides = array<i32>} : memref<1x1x12x8x16xf32, #tpu.memory_space<vmem>>, vector<1x1x1x8x16xf32>,
    %c0_127 = arith.constant 0 : index
    %c0_128 = arith.constant 0 : index
    %c5 = arith.constant 5 : index
    %c0_129 = arith.constant 0 : index
    %c0_130 = arith.constant 0 : index
    %242 = vector.load %arg6[%c0_127, %c0_128, %c5, %c0_129, %c0_130] : memref<1x1x12x8x16xf32, #tpu.memory_space<vmem>>, vector<1x1x1x8x16xf32>
    %243 = vector.shape_cast %242 : vector<1x1x1x8x16xf32> to vector<8x16xf32>
    %244 = arith.addf %243, %188 : vector<8x16xf32>
    %c0_131 = arith.constant 0 : index
    %c0_132 = arith.constant 0 : index
    %c5_133 = arith.constant 5 : index
    %c0_134 = arith.constant 0 : index
    %c0_135 = arith.constant 0 : index
    %245 = vector.load %arg6[%c0_131, %c0_132, %c5_133, %c0_134, %c0_135] : memref<1x1x12x8x16xf32, #tpu.memory_space<vmem>>, vector<1x1x1x8x16xf32>
    %246 = vector.shape_cast %245 : vector<1x1x1x8x16xf32> to vector<8x16xf32>
    %247 = vector.shape_cast %244 : vector<8x16xf32> to vector<1x1x1x8x16xf32>
    tpu.vector_store %arg6[%c0_131, %c0_132, %c5_133, %c0_134, %c0_135], %247 {strides = array<i32>} : memref<1x1x12x8x16xf32, #tpu.memory_space<vmem>>, vector<1x1x1x8x16xf32>,
    %c0_136 = arith.constant 0 : index
    %c0_137 = arith.constant 0 : index
    %c9 = arith.constant 9 : index
    %c0_138 = arith.constant 0 : index
    %c0_139 = arith.constant 0 : index
    %248 = vector.load %arg6[%c0_136, %c0_137, %c9, %c0_138, %c0_139] : memref<1x1x12x8x16xf32, #tpu.memory_space<vmem>>, vector<1x1x1x8x16xf32>
    %249 = vector.shape_cast %248 : vector<1x1x1x8x16xf32> to vector<8x16xf32>
    %250 = arith.addf %249, %191 : vector<8x16xf32>
    %c0_140 = arith.constant 0 : index
    %c0_141 = arith.constant 0 : index
    %c9_142 = arith.constant 9 : index
    %c0_143 = arith.constant 0 : index
    %c0_144 = arith.constant 0 : index
    %251 = vector.load %arg6[%c0_140, %c0_141, %c9_142, %c0_143, %c0_144] : memref<1x1x12x8x16xf32, #tpu.memory_space<vmem>>, vector<1x1x1x8x16xf32>
    %252 = vector.shape_cast %251 : vector<1x1x1x8x16xf32> to vector<8x16xf32>
    %253 = vector.shape_cast %250 : vector<8x16xf32> to vector<1x1x1x8x16xf32>
    tpu.vector_store %arg6[%c0_140, %c0_141, %c9_142, %c0_143, %c0_144], %253 {strides = array<i32>} : memref<1x1x12x8x16xf32, #tpu.memory_space<vmem>>, vector<1x1x1x8x16xf32>,
    %c0_145 = arith.constant 0 : index
    %c0_146 = arith.constant 0 : index
    %c2_147 = arith.constant 2 : index
    %c0_148 = arith.constant 0 : index
    %c0_149 = arith.constant 0 : index
    %254 = vector.load %arg6[%c0_145, %c0_146, %c2_147, %c0_148, %c0_149] : memref<1x1x12x8x16xf32, #tpu.memory_space<vmem>>, vector<1x1x1x8x16xf32>
    %255 = vector.shape_cast %254 : vector<1x1x1x8x16xf32> to vector<8x16xf32>
    %256 = arith.addf %255, %198 : vector<8x16xf32>
    %c0_150 = arith.constant 0 : index
    %c0_151 = arith.constant 0 : index
    %c2_152 = arith.constant 2 : index
    %c0_153 = arith.constant 0 : index
    %c0_154 = arith.constant 0 : index
    %257 = vector.load %arg6[%c0_150, %c0_151, %c2_152, %c0_153, %c0_154] : memref<1x1x12x8x16xf32, #tpu.memory_space<vmem>>, vector<1x1x1x8x16xf32>
    %258 = vector.shape_cast %257 : vector<1x1x1x8x16xf32> to vector<8x16xf32>
    %259 = vector.shape_cast %256 : vector<8x16xf32> to vector<1x1x1x8x16xf32>
    tpu.vector_store %arg6[%c0_150, %c0_151, %c2_152, %c0_153, %c0_154], %259 {strides = array<i32>} : memref<1x1x12x8x16xf32, #tpu.memory_space<vmem>>, vector<1x1x1x8x16xf32>,
    %c0_155 = arith.constant 0 : index
    %c0_156 = arith.constant 0 : index
    %c6 = arith.constant 6 : index
    %c0_157 = arith.constant 0 : index
    %c0_158 = arith.constant 0 : index
    %260 = vector.load %arg6[%c0_155, %c0_156, %c6, %c0_157, %c0_158] : memref<1x1x12x8x16xf32, #tpu.memory_space<vmem>>, vector<1x1x1x8x16xf32>
    %261 = vector.shape_cast %260 : vector<1x1x1x8x16xf32> to vector<8x16xf32>
    %262 = arith.addf %261, %201 : vector<8x16xf32>
    %c0_159 = arith.constant 0 : index
    %c0_160 = arith.constant 0 : index
    %c6_161 = arith.constant 6 : index
    %c0_162 = arith.constant 0 : index
    %c0_163 = arith.constant 0 : index
    %263 = vector.load %arg6[%c0_159, %c0_160, %c6_161, %c0_162, %c0_163] : memref<1x1x12x8x16xf32, #tpu.memory_space<vmem>>, vector<1x1x1x8x16xf32>
    %264 = vector.shape_cast %263 : vector<1x1x1x8x16xf32> to vector<8x16xf32>
    %265 = vector.shape_cast %262 : vector<8x16xf32> to vector<1x1x1x8x16xf32>
    tpu.vector_store %arg6[%c0_159, %c0_160, %c6_161, %c0_162, %c0_163], %265 {strides = array<i32>} : memref<1x1x12x8x16xf32, #tpu.memory_space<vmem>>, vector<1x1x1x8x16xf32>,
    %c0_164 = arith.constant 0 : index
    %c0_165 = arith.constant 0 : index
    %c10 = arith.constant 10 : index
    %c0_166 = arith.constant 0 : index
    %c0_167 = arith.constant 0 : index
    %266 = vector.load %arg6[%c0_164, %c0_165, %c10, %c0_166, %c0_167] : memref<1x1x12x8x16xf32, #tpu.memory_space<vmem>>, vector<1x1x1x8x16xf32>
    %267 = vector.shape_cast %266 : vector<1x1x1x8x16xf32> to vector<8x16xf32>
    %268 = arith.addf %267, %204 : vector<8x16xf32>
    %c0_168 = arith.constant 0 : index
    %c0_169 = arith.constant 0 : index
    %c10_170 = arith.constant 10 : index
    %c0_171 = arith.constant 0 : index
    %c0_172 = arith.constant 0 : index
    %269 = vector.load %arg6[%c0_168, %c0_169, %c10_170, %c0_171, %c0_172] : memref<1x1x12x8x16xf32, #tpu.memory_space<vmem>>, vector<1x1x1x8x16xf32>
    %270 = vector.shape_cast %269 : vector<1x1x1x8x16xf32> to vector<8x16xf32>
    %271 = vector.shape_cast %268 : vector<8x16xf32> to vector<1x1x1x8x16xf32>
    tpu.vector_store %arg6[%c0_168, %c0_169, %c10_170, %c0_171, %c0_172], %271 {strides = array<i32>} : memref<1x1x12x8x16xf32, #tpu.memory_space<vmem>>, vector<1x1x1x8x16xf32>,
    %c0_173 = arith.constant 0 : index
    %c0_174 = arith.constant 0 : index
    %c3_175 = arith.constant 3 : index
    %c0_176 = arith.constant 0 : index
    %c0_177 = arith.constant 0 : index
    %272 = vector.load %arg6[%c0_173, %c0_174, %c3_175, %c0_176, %c0_177] : memref<1x1x12x8x16xf32, #tpu.memory_space<vmem>>, vector<1x1x1x8x16xf32>
    %273 = vector.shape_cast %272 : vector<1x1x1x8x16xf32> to vector<8x16xf32>
    %274 = arith.addf %273, %211 : vector<8x16xf32>
    %c0_178 = arith.constant 0 : index
    %c0_179 = arith.constant 0 : index
    %c3_180 = arith.constant 3 : index
    %c0_181 = arith.constant 0 : index
    %c0_182 = arith.constant 0 : index
    %275 = vector.load %arg6[%c0_178, %c0_179, %c3_180, %c0_181, %c0_182] : memref<1x1x12x8x16xf32, #tpu.memory_space<vmem>>, vector<1x1x1x8x16xf32>
    %276 = vector.shape_cast %275 : vector<1x1x1x8x16xf32> to vector<8x16xf32>
    %277 = vector.shape_cast %274 : vector<8x16xf32> to vector<1x1x1x8x16xf32>
    tpu.vector_store %arg6[%c0_178, %c0_179, %c3_180, %c0_181, %c0_182], %277 {strides = array<i32>} : memref<1x1x12x8x16xf32, #tpu.memory_space<vmem>>, vector<1x1x1x8x16xf32>,
    %c0_183 = arith.constant 0 : index
    %c0_184 = arith.constant 0 : index
    %c7 = arith.constant 7 : index
    %c0_185 = arith.constant 0 : index
    %c0_186 = arith.constant 0 : index
    %278 = vector.load %arg6[%c0_183, %c0_184, %c7, %c0_185, %c0_186] : memref<1x1x12x8x16xf32, #tpu.memory_space<vmem>>, vector<1x1x1x8x16xf32>
    %279 = vector.shape_cast %278 : vector<1x1x1x8x16xf32> to vector<8x16xf32>
    %280 = arith.addf %279, %214 : vector<8x16xf32>
    %c0_187 = arith.constant 0 : index
    %c0_188 = arith.constant 0 : index
    %c7_189 = arith.constant 7 : index
    %c0_190 = arith.constant 0 : index
    %c0_191 = arith.constant 0 : index
    %281 = vector.load %arg6[%c0_187, %c0_188, %c7_189, %c0_190, %c0_191] : memref<1x1x12x8x16xf32, #tpu.memory_space<vmem>>, vector<1x1x1x8x16xf32>
    %282 = vector.shape_cast %281 : vector<1x1x1x8x16xf32> to vector<8x16xf32>
    %283 = vector.shape_cast %280 : vector<8x16xf32> to vector<1x1x1x8x16xf32>
    tpu.vector_store %arg6[%c0_187, %c0_188, %c7_189, %c0_190, %c0_191], %283 {strides = array<i32>} : memref<1x1x12x8x16xf32, #tpu.memory_space<vmem>>, vector<1x1x1x8x16xf32>,
    %c0_192 = arith.constant 0 : index
    %c0_193 = arith.constant 0 : index
    %c11 = arith.constant 11 : index
    %c0_194 = arith.constant 0 : index
    %c0_195 = arith.constant 0 : index
    %284 = vector.load %arg6[%c0_192, %c0_193, %c11, %c0_194, %c0_195] : memref<1x1x12x8x16xf32, #tpu.memory_space<vmem>>, vector<1x1x1x8x16xf32>
    %285 = vector.shape_cast %284 : vector<1x1x1x8x16xf32> to vector<8x16xf32>
    %286 = arith.addf %285, %217 : vector<8x16xf32>
    %c0_196 = arith.constant 0 : index
    %c0_197 = arith.constant 0 : index
    %c11_198 = arith.constant 11 : index
    %c0_199 = arith.constant 0 : index
    %c0_200 = arith.constant 0 : index
    %287 = vector.load %arg6[%c0_196, %c0_197, %c11_198, %c0_199, %c0_200] : memref<1x1x12x8x16xf32, #tpu.memory_space<vmem>>, vector<1x1x1x8x16xf32>
    %288 = vector.shape_cast %287 : vector<1x1x1x8x16xf32> to vector<8x16xf32>
    %289 = vector.shape_cast %286 : vector<8x16xf32> to vector<1x1x1x8x16xf32>
    tpu.vector_store %arg6[%c0_196, %c0_197, %c11_198, %c0_199, %c0_200], %289 {strides = array<i32>} : memref<1x1x12x8x16xf32, #tpu.memory_space<vmem>>, vector<1x1x1x8x16xf32>,
    return
  }
  func.func @transform_0(%arg0: i32, %arg1: i32, %arg2: i32) -> (i32, i32, i32, i32) {
    %c1_i32 = arith.constant 1 : i32
    %0 = arith.muli %arg1, %c1_i32 : i32
    %1 = arith.addi %0, %arg2 : i32
    %c0_i32 = arith.constant 0 : i32
    %2 = arith.minsi %1, %c0_i32 : i32
    %c0_i32_0 = arith.constant 0 : i32
    %c0_i32_1 = arith.constant 0 : i32
    %c0_i32_2 = arith.constant 0 : i32
    return %arg0, %c0_i32_0, %2, %c0_i32_1 : i32, i32, i32, i32
  }
  func.func @transform_1(%arg0: i32, %arg1: i32, %arg2: i32) -> (i32, i32, i32) {
    %c1_i32 = arith.constant 1 : i32
    %0 = arith.muli %arg1, %c1_i32 : i32
    %1 = arith.addi %0, %arg2 : i32
    %c0_i32 = arith.constant 0 : i32
    %2 = arith.minsi %1, %c0_i32 : i32
    %c0_i32_0 = arith.constant 0 : i32
    %c0_i32_1 = arith.constant 0 : i32
    return %arg0, %2, %c0_i32_0 : i32, i32, i32
  }
  func.func @transform_2(%arg0: i32, %arg1: i32, %arg2: i32) -> (i32, i32) {
    %c1_i32 = arith.constant 1 : i32
    %0 = arith.muli %arg1, %c1_i32 : i32
    %1 = arith.addi %0, %arg2 : i32
    %c0_i32 = arith.constant 0 : i32
    %2 = arith.minsi %1, %c0_i32 : i32
    %c0_i32_0 = arith.constant 0 : i32
    %c0_i32_1 = arith.constant 0 : i32
    return %2, %c0_i32_0 : i32, i32
  }
  func.func @transform_3(%arg0: i32, %arg1: i32, %arg2: i32) -> (i32, i32, i32, i32, i32) {
    %c0_i32 = arith.constant 0 : i32
    %c0_i32_0 = arith.constant 0 : i32
    %c0_i32_1 = arith.constant 0 : i32
    %c0_i32_2 = arith.constant 0 : i32
    return %arg0, %arg1, %c0_i32, %c0_i32_0, %c0_i32_1 : i32, i32, i32, i32, i32
  }
}

</mosaic_0001>

<bundles_post_ra>
// kernel: tpu_custom_call.1
= control target key start
LH: loop header
LB: loop body
LE: loop exit
PB: predicated region body
PF: predicated region fallthrough
CT: control target
= control target key end

     0   :  { %s1304_s0 = inlined_call_operand.hbm [shape: f32[2,4,16,16], index: 0, kind: input, shape index: {}]   ;;  %s1305_s1 = inlined_call_operand.hbm [shape: s32[2,16,16], index: 1, kind: input, shape index: {}]   ;;  %s1306_s2 = inlined_call_operand.vmem [shape: f32[16,1], index: 2, kind: input, shape index: {}]   ;;  %s1307_s3 = inlined_call_operand.hbm [shape: f32[2,1,12,8,16], index: 3, kind: output, shape index: {}]  }
   0x1   :  { %1308 = sst [smem:[#allocation11_spill]] %s1304_s0 }
   0x2   :  { %8 = vsyncpa [#allocation3], 0 }
   0x3   :  { %10 = vsyncpa [#allocation3 + $0x1], 0 }
   0x4   :  { %11 = vsyncpa [#allocation6], 0 }
   0x5   :  { %13 = vsyncpa [#allocation6 + $0x1], 0 }
   0x6   :  { %14 = vsyncpa [#allocation4], 0 }
   0x7   :  { %16 = vsyncpa [#allocation4 + $0x1], 0  ;;  %s994_s12 = smov 0   ;;  %s996_s13 = smov 0  }
   0x8   :  { %s998_s14 = smov 0   ;;  %s1000_s15 = smov 0  }
   0x9   :  { %s1002_s16 = smov 0   ;;  %s1004_s17 = smov 0  }
   0xa LB: > { %s694_s18 = sadd.s32 4294967295, %s966_s17   ;;  %s695_s19 = sadd.s32 4294967294, %s966_s17   ;;  %s966_s17 = sphi %s1004_s17, %s22_s17   ;;  %s962_s16 = sphi %s1002_s16, %s1319_s16   ;;  %s958_s15 = sphi %s1000_s15, %s1318_s15   ;;  %s954_s14 = sphi %s998_s14, %s1317_s14   ;;  %s950_s13 = sphi %s996_s13, %s1316_s13   ;;  %s946_s12 = sphi %s994_s12, %s1315_s12  }
   0xb   : > { %s41_s20 = sadd.s32 1, %s962_s16  ;;  %s56_s21 = sadd.s32 1, %s954_s14 }
   0xc   : > { %p43_p0 = scmp.ge.s32.totalorder %s41_s20, 2  ;;  %p63_p1 = scmp.ne.s32.totalorder %s954_s14, %s950_s13 }
   0xd   : > { %p64_p2 = scmp.eq.s32.totalorder %s966_s17, 0  ;;  %p69_p3 = scmp.ne.s32.totalorder %s950_s13, %s946_s12 }
   0xe   : > { %s1321_s20 = smov (%p43_p0, %s41_s20), 0  ;;  %p70_p5 = scmp.eq.s32.totalorder %s694_s18, 0 }
   0xf   : > { %p1035_p4 = por %p64_p2, %p63_p1  ;;  %s51_s23 = ssub.s32 %s962_s16, %s1321_s20 }
  0x10   : > { %p161_p6 = scmp.eq.s32.totalorder %s694_s18, 1  ;;  %p54_p7 = scmp.eq.s32.totalorder %s51_s23, 0 }
  0x11   : > { %p1041_p8 = por %p70_p5, %p69_p3  ;;  %p167_p10 = scmp.eq.s32.totalorder %s695_s19, 1 }
  0x12   : > { %p1045_p9 = por %p161_p6, %p63_p1  ;;  %p698_p12 = scmp.ge.s32.totalorder %s966_s17, 2 }
  0x13   : > { %s1050_s26 = scalar_select %p54_p7, %s954_s14, %s56_s21  }
  0x14   : > { %p1052_p11 = por %p167_p10, %p69_p3  ;;  %p763_p13 = scmp.lt.s32.totalorder %s966_s17, 2 }
  0x15   : > { %s1059_s28 = sand.u32 1, %s954_s14   ;;  %s742_s30 = sshll.u32 %s962_s16, 6 }
  0x16   : > { %s699_s29 = sshll.u32 %s1059_s28, 6  ;;  %s1313_s0 = sld [smem:[#allocation11_spill]] }
  0x17   : > { %s206_s7 = scalar_lea.vmem [#allocation2], %s699_s29  ;;  %p1068_p0 = pnand %p763_p13, %p1035_p4 }
  0x18   : > { %s219_s8 = sshll.u32 %s206_s7, 4  ;;  %p705_p1 = scmp.ge.s32.totalorder %s966_s17, 1  ;;  %s220_s8 = int_to_ptr.vmem [resolvable:$true] %s219_s8 }
  0x19   : > { %s203_s11 = scalar_lea.sflag [#allocation3], %s1059_s28  ;;  %s968_s18 = smov 128  }
  0x1a   : > { %s969_s19 = smov 8   ;;  %p254_p2 = scmp.lt.s32.totalorder %s966_s17, 3 }
  0x1b   : > { %s702_s21 = sshll.u32 %s1059_s28, 4  ;;  %s743_s23 = sshll.u32 %s962_s16, 4 }
  0x1c   : > { %s216_s6 = scalar_lea.hbm %s1313_s0, %s742_s30  ;;  %p255_p3 = pnand %p705_p1, %p254_p2 }
  0x1d   : > { %s217_s9 = sshll.u32 %s216_s6, 4  ;;  %s243_s22 = scalar_lea.hbm %s1305_s1, %s743_s23  ;;  %s218_s9 = int_to_ptr.hbm [resolvable:$true] %s217_s9 }
  0x1e   : > { %755 = dma.hbm_to_vmem [thread:$0]  (!%p1068_p0), %s218_s9, 1024, %s220_s8, %s203_s11, %s968_s18, %s968_s18, %s969_s19  }
  0x1f   : > { %s233_s4 = scalar_lea.vmem [#allocation5], %s702_s21  ;;  %s244_s6 = sshll.u32 %s243_s22, 4  ;;  %s245_s6 = int_to_ptr.hbm [resolvable:$true] %s244_s6 }
  0x20   : > { %s246_s5 = sshll.u32 %s233_s4, 4  ;;  %s230_s7 = scalar_lea.sflag [#allocation6], %s1059_s28  ;;  %s247_s5 = int_to_ptr.vmem [resolvable:$true] %s246_s5 }
  0x21   : > { %758 = dma.hbm_to_vmem [thread:$0]  (!%p1068_p0), %s245_s6, 256, %s247_s5, %s230_s7, %s968_s18, %s968_s18, %s969_s19  }
  0x22   : > { %258 = sbr.rel (%p255_p3) target bundleno = 190 (0xbe), region = 32  ;;  %s1086_s8 = sand.u32 (!%p255_p3), 1, %s950_s13  }
  0x23   : > { %s706_s9 = sshll.u32 (!%p255_p3), %s1086_s8, 6  ;;  %s261_s11 = scalar_lea.sflag (!%p255_p3), [#allocation3], %s1086_s8 }
  0x24   : > { %s1090_s0 = scalar_lea.vmem (!%p255_p3), [#allocation2], %s706_s9 }
  0x27   : > { %933 = dma.done.wait (%p1041_p8), %s261_s11, 1024  }
  0x28   : > { %935 = vsyncadd (%p1041_p8), %s261_s11, 4294966272  ;;  %s707_s28 = sshll.u32 %s1086_s8, 4  ;;  %s271_s10 = scalar_lea.sflag [#allocation6], %s1086_s8 }
  0x29   : > { %s1098_s18 = scalar_lea.vmem [#allocation5], %s707_s28 }
  0x2a   : > { %937 = dma.done.wait (%p1041_p8), %s271_s10, 256  }
  0x2b   : > { %939 = vsyncadd (%p1041_p8), %s271_s10, 4294967040  ;;  %v970_v0 = vmov 0   ;;  %v375_v1 = vld [vmem:[%s1306_s2] sm:$0xff]  ;;  %v716_v2 = vld [vmem:[%s1306_s2 + $0x8] sm:$0xff]  ;;  %s744_s30 = smul.u32 96, %s1086_s8  ;;  %vm337_vm0 = vcmask 130048  }
  0x2c   : > { %819 = vset.pattern.permute.xlu0 %v970_v0  ;;  %v971_v3 = vmov 0.0   ;;  %v352_v4 = vld [vmem:[%s1090_s0] sm:$0xff]  ;;  %v708_v5 = vld [vmem:[%s1090_s0 + $0x10] sm:$0xff]  ;;  %v711_v6 = vld [vmem:[%s1090_s0 + $0x8] sm:$0xff]  ;;  %s540_s7 = scalar_lea.sflag [#allocation4], %s1086_s8 }
  0x2d   : > { %383 = vperm.xlu0 %819, %v375_v1   ;;  %s1111_s24 = scalar_lea.vmem [#allocation7], %s744_s30  ;;  %v712_v7 = vld [vmem:[%s1090_s0 + $0x18] sm:$0xff]  ;;  %vm356_vm1 = vcmp.gt.f32.partialorder %v708_v5, %v352_v4  ;;  %v709_v9 = vld [vmem:[%s1090_s0 + $0x20] sm:$0xff]  ;;  %v713_v11 = vld [vmem:[%s1090_s0 + $0x28] sm:$0xff] }
  0x2e   : > { %338 = vst.msk [vmem:[%s1111_s24] sm:$0xff] %vm337_vm0, %v971_v3  ;;  %vm425_vm2 = vcmp.gt.f32.partialorder %v712_v7, %v711_v6  ;;  %v357_v8 = vsel %vm356_vm1, %v708_v5, %v352_v4  ;;  %v358_v12 = vsel %vm356_vm1, 1, %v970_v0  ;;  %v710_v14 = vld [vmem:[%s1090_s0 + $0x30] sm:$0xff]  ;;  %v714_v17 = vld [vmem:[%s1090_s0 + $0x38] sm:$0xff]  ;;  %s745_s0 = smul.u32 96, %s958_s15  ;;  %s554_s5 = sshll.u32 %s1111_s24, 4  ;;  %s555_s5 = int_to_ptr.vmem [resolvable:$true] %s554_s5 }
  0x2f   : > { %339 = vst.msk [vmem:[%s1111_s24 + $0x8] sm:$0xff] %vm337_vm0, %v971_v3  ;;  %v426_v10 = vsel %vm425_vm2, %v712_v7, %v711_v6  ;;  %vm362_vm3 = vcmp.gt.f32.partialorder %v709_v9, %v357_v8  ;;  %v427_v15 = vsel %vm425_vm2, 1, %v970_v0  ;;  %v370_v19 = vld [vmem:[%s1098_s18] sm:$0xff]  ;;  %v715_v21 = vld [vmem:[%s1098_s18 + $0x8] sm:$0xff]  ;;  %s900_s18 = scalar_lea.hbm %s1307_s3, 192 }
  0x30   : > { %340 = vst.msk [vmem:[%s1111_s24 + $0x10] sm:$0xff] %vm337_vm0, %v971_v3  ;;  %vm431_vm4 = vcmp.gt.f32.partialorder %v713_v11, %v426_v10  ;;  %v363_v13 = vsel %vm362_vm3, %v709_v9, %v357_v8  ;;  %v364_v18 = vsel %vm362_vm3, 2, %v358_v12  ;;  %vm377_vm7 = vcmp.eq.s32.totalorder %v370_v19, 4294967196  ;;  %s553_s4 = scalar_lea.hbm %s1307_s3, %s745_s0 }
  0x31   : > { %341 = vst.msk [vmem:[%s1111_s24 + $0x18] sm:$0xff] %vm337_vm0, %v971_v3  ;;  %v432_v16 = vsel %vm431_vm4, %v713_v11, %v426_v10  ;;  %vm368_vm5 = vcmp.gt.f32.partialorder %v710_v14, %v363_v13  ;;  %v433_v20 = vsel %vm431_vm4, 2, %v427_v15  ;;  %vm448_vm8 = vcmp.eq.s32.totalorder %v715_v21, 4294967196  ;;  %s556_s6 = sshll.u32 %s553_s4, 4  ;;  %s557_s6 = int_to_ptr.hbm [resolvable:$true] %s556_s6 }
  0x32   : > { %342 = vst.msk [vmem:[%s1111_s24 + $0x20] sm:$0xff] %vm337_vm0, %v971_v3  ;;  %vm437_vm6 = vcmp.gt.f32.partialorder %v714_v17, %v432_v16  ;;  %v369_v22 = vsel %vm368_vm5, 3, %v364_v18  ;;  %v1149_v26 = vsel %vm377_vm7, 4294967295, %v370_v19  ;;  %v1155_v28 = vsel %vm448_vm8, 4294967295, %v715_v21  ;;  %s894_s9 = sshra.s32 %s557_s6, 4  ;;  %s895_s9 = int_to_ptr.hbm [resolvable:$true] %s894_s9 }
  0x33   : > { %343 = vst.msk [vmem:[%s1111_s24 + $0x28] sm:$0xff] %vm337_vm0, %v971_v3  ;;  %v438_v23 = vsel %vm437_vm6, 3, %v433_v20  ;;  %v1147_v24 = vsel %vm377_vm7, 4294967295, %v369_v22  ;;  %vm388_vm14 = vcmp.eq.s32.totalorder %v1149_v26, 0  ;;  %vm459_vm3 = vcmp.eq.s32.totalorder %v1155_v28, 0  ;;  %s896_s11 = scalar_lea.hbm %s895_s9, 96  ;;  %p901_p7 = scmp.lt.s32.totalorder %s895_s9, %s1307_s3 }
  0x34   : > { %344 = vst.msk [vmem:[%s1111_s24 + $0x30] sm:$0xff] %vm337_vm0, %v971_v3  ;;  %v1151_v27 = vsel %vm448_vm8, 4294967295, %v438_v23  ;;  %vm380_vm9 = vcmp.eq.s32.totalorder %v1149_v26, %v1147_v24  ;;  %vm389_vm10 = vcmp.eq.s32.totalorder %v1147_v24, 0  ;;  %vm397_vm11 = vcmp.eq.s32.totalorder %v1147_v24, 1  ;;  %p897_p4 = scmp.ne.s32.totalorder %s895_s9, %s896_s11  ;;  %p902_p8 = scmp.lt.s32.totalorder %s900_s18, %s896_s11 }
  0x35   : > { %454 = vperm.xlu0 %819, %v716_v2   ;;  %345 = vst.msk [vmem:[%s1111_s24 + $0x38] sm:$0xff] %vm337_vm0, %v971_v3  ;;  %vm405_vm12 = vcmp.eq.s32.totalorder %v1147_v24, 2  ;;  %vm460_vm13 = vcmp.eq.s32.totalorder %v1151_v27, 0  ;;  %vm451_vm15 = vcmp.eq.s32.totalorder %v1155_v28, %v1151_v27  ;;  %vm468_vm1 = vcmp.eq.s32.totalorder %v1151_v27, 1  ;;  %v491_v50 = vld [vmem:[%s1111_s24] sm:$0xff] }
  0x36   : > { %346 = vst.msk [vmem:[%s1111_s24 + $0x40] sm:$0xff] %vm337_vm0, %v971_v3  ;;  %vm476_vm2 = vcmp.eq.s32.totalorder %v1151_v27, 2  ;;  %vm467_vm4 = vcmp.eq.s32.totalorder %v1155_v28, 1  ;;  %vm413_vm5 = vcmp.eq.s32.totalorder %v1147_v24, 3  ;;  %vm484_vm6 = vcmp.eq.s32.totalorder %v1151_v27, 3  ;;  %v721_v57 = vld [vmem:[%s1111_s24 + $0x8] sm:$0xff]  ;;  %p898_p5 = pnand %p897_p4, %p1045_p9  ;;  %p903_p10 = por %p902_p8, %p901_p7 }
  0x37   : > { %347 = vst.msk [vmem:[%s1111_s24 + $0x48] sm:$0xff] %vm337_vm0, %v971_v3  ;;  %vm396_vm7 = vcmp.eq.s32.totalorder %v1149_v26, 1  ;;  %vm404_vm8 = vcmp.eq.s32.totalorder %v1149_v26, 2  ;;  %v727_v8 = vld [vmem:[%s1111_s24 + $0x10] sm:$0xff] }
  0x38   : > { %348 = vst.msk [vmem:[%s1111_s24 + $0x50] sm:$0xff] %vm337_vm0, %v971_v3  ;;  %v733_v21 = vld [vmem:[%s1111_s24 + $0x18] sm:$0xff]  ;;  %p899_p6 = pneg %p898_p5 }
  0x39   : > { %349 = vst.msk [vmem:[%s1111_s24 + $0x58] sm:$0xff] %vm337_vm0, %v971_v3  ;;  %v717_v51 = vld [vmem:[%s1111_s24 + $0x20] sm:$0xff] }
  0x3a   : > { %v723_v62 = vld [vmem:[%s1111_s24 + $0x28] sm:$0xff]  ;;  %p904_p13 = pnand %p903_p10, %p899_p6 }
  0x3b   : > { %v729_v13 = vld [vmem:[%s1111_s24 + $0x30] sm:$0xff] }
  0x3c   : > { %v735_v24 = vld [vmem:[%s1111_s24 + $0x38] sm:$0xff] }
  0x3d   : > { %v719_v52 = vld [vmem:[%s1111_s24 + $0x40] sm:$0xff] }
  0x3e   : > { %v725_v3 = vld [vmem:[%s1111_s24 + $0x48] sm:$0xff] }
  0x3f   : > { %v731_v17 = vld [vmem:[%s1111_s24 + $0x50] sm:$0xff] }
  0x9f   : > { %v384_v25 = vpop.permute.xlu0 %383 }
  0xa0   : > { %v386_v29 = vsel %vm380_vm9, %v384_v25, 0.0  ;;  %v1161_v30 = vsel %vm380_vm9, 0.0, %v384_v25  ;;  %vm475_vm9 = vcmp.eq.s32.totalorder %v1155_v28, 2 }
  0xa1   : > { %v390_v32 = vsel %vm388_vm14, %v386_v29, 0.0  ;;  %v392_v33 = vsel %vm389_vm10, %v1161_v30, 0.0  ;;  %v394_v40 = vsel %vm388_vm14, %v1161_v30, 0.0  ;;  %v398_v41 = vsel %vm396_vm7, %v386_v29, 0.0 }
  0xa2   : > { %v400_v48 = vsel %vm397_vm11, %v1161_v30, 0.0  ;;  %vm412_vm10 = vcmp.eq.s32.totalorder %v1149_v26, 3  ;;  %v402_v53 = vsel %vm396_vm7, %v1161_v30, 0.0  ;;  %v406_v54 = vsel %vm404_vm8, %v386_v29, 0.0  ;;  %v737_v26 = vld [vmem:[%s1111_s24 + $0x58] sm:$0xff] }
  0xa3   : > { %v408_v58 = vsel %vm405_vm12, %v1161_v30, 0.0  ;;  %v410_v4 = vsel %vm404_vm8, %v1161_v30, 0.0  ;;  %v414_v9 = vsel %vm412_vm10, %v386_v29, 0.0  ;;  %v416_v14 = vsel %vm413_vm5, %v1161_v30, 0.0 }
  0xa4   : > { %v418_v18 = vsel %vm412_vm10, %v1161_v30, 0.0 }
  0xa7   : > { %v455_v31 = vpop.permute.xlu0 %454 }
  0xa8   : > { %v457_v34 = vsel %vm451_vm15, %v455_v31, 0.0  ;;  %v458_v35 = vsel %vm451_vm15, 0.0, %v455_v31 }
  0xa9   : > { %v461_v36 = vsel %vm459_vm3, %v457_v34, 0.0  ;;  %v463_v37 = vsel %vm460_vm13, %v458_v35, 0.0  ;;  %v465_v38 = vsel %vm459_vm3, %v458_v35, 0.0  ;;  %v469_v39 = vsel %vm467_vm4, %v457_v34, 0.0 }
  0xaa   : > { %v462_v42 = vadd.f32 %v461_v36, %v390_v32  ;;  %v464_v43 = vadd.f32 %v463_v37, %v392_v33  ;;  %v466_v44 = vadd.f32 %v465_v38, %v394_v40  ;;  %v471_v45 = vsel %vm468_vm1, %v458_v35, 0.0 }
  0xab   : > { %v473_v46 = vsel %vm467_vm4, %v458_v35, 0.0  ;;  %v477_v47 = vsel %vm475_vm9, %v457_v34, 0.0  ;;  %vm483_vm13 = vcmp.eq.s32.totalorder %v1155_v28, 3  ;;  %v470_v49 = vadd.f32 %v469_v39, %v398_v41 }
  0xac   : > { %v472_v55 = vadd.f32 %v471_v45, %v400_v48  ;;  %v479_v56 = vsel %vm476_vm2, %v458_v35, 0.0  ;;  %v474_v59 = vadd.f32 %v473_v46, %v402_v53  ;;  %v478_v60 = vadd.f32 %v477_v47, %v406_v54 }
  0xad   : > { %v481_v61 = vsel %vm475_vm9, %v458_v35, 0.0  ;;  %v485_v63 = vsel %vm483_vm13, %v457_v34, 0.0  ;;  %v492_v0 = vadd.f32 %v491_v50, %v462_v42  ;;  %v497_v1 = vadd.f32 %v717_v51, %v464_v43 }
  0xae   : > { %v501_v2 = vadd.f32 %v719_v52, %v466_v44  ;;  %v480_v5 = vadd.f32 %v479_v56, %v408_v58  ;;  %v487_v6 = vsel %vm484_vm6, %v458_v35, 0.0  ;;  %v505_v7 = vadd.f32 %v721_v57, %v470_v49 }
  0xaf   : > { %v482_v10 = vadd.f32 %v481_v61, %v410_v4  ;;  %v489_v11 = vsel %vm483_vm13, %v458_v35, 0.0  ;;  %494 = vst.msk [vmem:[%s1111_s24] sm:$0xff] %vm337_vm0, %v492_v0  ;;  %v509_v12 = vadd.f32 %v723_v62, %v472_v55  ;;  %v486_v15 = vadd.f32 %v485_v63, %v414_v9 }
  0xb0   : > { %718 = vst.msk [vmem:[%s1111_s24 + $0x20] sm:$0xff] %vm337_vm0, %v497_v1  ;;  %v513_v16 = vadd.f32 %v725_v3, %v474_v59  ;;  %v488_v19 = vadd.f32 %v487_v6, %v416_v14  ;;  %v517_v20 = vadd.f32 %v727_v8, %v478_v60  ;;  %v490_v22 = vadd.f32 %v489_v11, %v418_v18 }
  0xb1   : > { %720 = vst.msk [vmem:[%s1111_s24 + $0x40] sm:$0xff] %vm337_vm0, %v501_v2  ;;  %v521_v23 = vadd.f32 %v729_v13, %v480_v5  ;;  %v525_v25 = vadd.f32 %v731_v17, %v482_v10  ;;  %v529_v27 = vadd.f32 %v733_v21, %v486_v15 }
  0xb2   : > { %722 = vst.msk [vmem:[%s1111_s24 + $0x8] sm:$0xff] %vm337_vm0, %v505_v7  ;;  %v533_v28 = vadd.f32 %v735_v24, %v488_v19  ;;  %v537_v29 = vadd.f32 %v737_v26, %v490_v22 }
  0xb3   : > { %724 = vst.msk [vmem:[%s1111_s24 + $0x28] sm:$0xff] %vm337_vm0, %v509_v12 }
  0xb4   : > { %726 = vst.msk [vmem:[%s1111_s24 + $0x48] sm:$0xff] %vm337_vm0, %v513_v16 }
  0xb5   : > { %728 = vst.msk [vmem:[%s1111_s24 + $0x10] sm:$0xff] %vm337_vm0, %v517_v20 }
  0xb6   : > { %730 = vst.msk [vmem:[%s1111_s24 + $0x30] sm:$0xff] %vm337_vm0, %v521_v23 }
  0xb7   : > { %732 = vst.msk [vmem:[%s1111_s24 + $0x50] sm:$0xff] %vm337_vm0, %v525_v25 }
  0xb8   : > { %734 = vst.msk [vmem:[%s1111_s24 + $0x18] sm:$0xff] %vm337_vm0, %v529_v27 }
  0xb9   : > { %736 = vst.msk [vmem:[%s1111_s24 + $0x38] sm:$0xff] %vm337_vm0, %v533_v28 }
  0xba   : > { %738 = vst.msk [vmem:[%s1111_s24 + $0x58] sm:$0xff] %vm337_vm0, %v537_v29 }
  0xbb   : > { %907 = shalt.err (!%p904_p13)
}
  0xbc   : > { %s972_s8 = smov 128   ;;  %s973_s23 = smov 8  }
  0xbd   : > { %750 = dma.vmem_to_hbm [thread:$0]  (%p1045_p9), %s555_s5, 1536, %s557_s6, %s540_s7, %s972_s8, %s972_s8, %s973_s23  }
  0xbe PF: > { %s571_s29 = sand.u32 1, %s946_s12   ;;  %p760_p0 = pnand %p698_p12, %p1052_p11 }
  0xbf   : > { %s572_s30 = scalar_lea.sflag [#allocation4], %s571_s29 }
  0xc0   : > { %p761_p1 = pneg %p760_p0 }
  0xc2   : > { %941 = dma.done.wait (%p761_p1), %s572_s30, 1536  }
  0xc3   : > { %943 = vsyncadd (%p761_p1), %s572_s30, 4294965760  ;;  %s22_s17 = sadd.s32 1, %s966_s17   ;;  %s1315_s12 = smov %s950_s13 }
  0xc4   : > { %p19_p2 = scmp.ge.s32.totalorder %s22_s17, 4   ;;  %s1316_s13 = smov %s954_s14 }
  0xc5   : > { %s1317_s14 = smov %s1050_s26  ;;  %s1318_s15 = smov %s962_s16 }
  0xc6   : > { %s1319_s16 = smov %s1321_s20  ;;  %21 = sbr.rel (!%p19_p2) target bundleno = 10 (0xa), region = 117 }
  0xcb   :  { %578 = vsyncpa [#allocation3], 1 }
  0xcc   :  { %580 = vsyncpa [#allocation3 + $0x1], 1 }
  0xcd   :  { %581 = vsyncpa [#allocation6], 1 }
  0xce   :  { %583 = vsyncpa [#allocation6 + $0x1], 1 }
  0xcf   :  { %584 = vsyncpa [#allocation4], 1 }
  0xd0   :  { %586 = vsyncpa [#allocation4 + $0x1], 1 }

</bundles_post_ra>
